<compile_context>
chip_gen: v5e
topology: v5e:2x2
jax: 0.10.0
libtpu: 0.0.40
codegen_flags: <defaults>
</compile_context>

<pallas_src>
import math

import jax
import jax.numpy as jnp
from jax.experimental import pallas as pl
from jax.experimental.pallas import tpu as pltpu


VMEM_LIMIT = 48 * 1024 * 1024   # > default scoped (16/32 MiB), < v7x physical (64 MiB)
DEC_TV = 512                    # decoder vocab tile (512..2048 per HBM-roofline sweep)


# ----------------------------- in-kernel math helpers -----------------------------

_SQRT_2_OVER_PI = 0.7978845608028654


def _gelu(x):
    # tanh-approximation GELU (lowers to the EUP tanh unit).
    # TODO(synk): exact erf-GELU (models.gelu) differs by <~1e-3 abs; lax.erf has no
    # clean Mosaic lowering and the rational-poly fallback is ~10 dependent VALU muls.
    return 0.5 * x * (1.0 + jnp.tanh(_SQRT_2_OVER_PI * (x + 0.044715 * x * x * x)))


def _layernorm(x, gamma, beta, eps=1e-12):
    # models.LayerNorm (variance_epsilon = 1e-12); stats kept in f32.
    u = jnp.mean(x, axis=-1, keepdims=True)
    s = jnp.mean((x - u) ** 2, axis=-1, keepdims=True)
    return gamma * ((x - u) * jax.lax.rsqrt(s + eps)) + beta


# ----------------------------------- kernels ---------------------------------------

def embed_kernel(tok_ref, pos_ref, seg_ref, g_ref, be_ref, out_ref):
    """tok_embed + pos_embed + seg_embed, then LayerNorm. Bt batch rows per step."""
    e = tok_ref[...] + pos_ref[...] + seg_ref[...]          # (Bt, S, D) f32
    out_ref[...] = _layernorm(e, g_ref[...], be_ref[...]).astype(out_ref.dtype)


def make_stack_kernel(Bt, S, D, H, Dh, Dff):
    """Whole transformer stack: grid = (batch_block, layer); h carried in VMEM scratch."""
    inv_sqrt = 1.0 / math.sqrt(Dh)
    bf16, f32 = jnp.bfloat16, jnp.float32
    R = Bt * S

    def kernel(h_ref, bias_ref,
               wqkv_ref, bqkv_ref, wo_ref, bo_ref, g1_ref, be1_ref,
               w1_ref, bf1_ref, w2_ref, bf2_ref, g2_ref, be2_ref,
               out_ref, hcur_ref, ctx_ref):
        l = pl.program_id(1)

        # Load the bf16 HBM activation into the f32 VMEM carry at the first layer only.
        @pl.when(l == 0)
        def _():
            hcur_ref[...] = h_ref[...].reshape(R, D).astype(f32)

        x = hcur_ref[...]                                    # (R, D) f32 residual stream
        xb = x.astype(bf16)
        bias = bias_ref[...]                                 # (Bt, 1, S): -1e4*(1-mask)

        # Fused QKV projection: one (R, D) x (D, 3D) MXU push.
        qkv = jnp.dot(xb, wqkv_ref[0], preferred_element_type=f32) + bqkv_ref[0]
        q3 = qkv[:, :D].astype(bf16).reshape(Bt, S, D)       # 128-aligned lane slices
        k3 = qkv[:, D:2 * D].astype(bf16).reshape(Bt, S, D)
        v3 = qkv[:, 2 * D:].astype(bf16).reshape(Bt, S, D)

        # Per-head attention, batched over the Bt batch rows; context accumulated in a
        # preallocated VMEM scratch (no concatenate of H partial tiles).
        for hh in range(H):
            sl = slice(hh * Dh, (hh + 1) * Dh)
            s = jnp.einsum('bqd,bkd->bqk', q3[:, :, sl], k3[:, :, sl],
                           preferred_element_type=f32) * inv_sqrt      # (Bt, S, S)
            s = s + bias                                               # key mask bias
            s = s - jnp.max(s, axis=-1, keepdims=True)                 # softmax in f32
            p = jnp.exp(s)
            p = p * pl.reciprocal(jnp.sum(p, axis=-1, keepdims=True), approx=True)
            ctx_h = jnp.einsum('bqk,bkd->bqd', p.astype(bf16), v3[:, :, sl],
                               preferred_element_type=f32)             # (Bt, S, Dh)
            ctx_ref[:, sl] = ctx_h.reshape(R, Dh)

        attn = jnp.dot(ctx_ref[...].astype(bf16), wo_ref[0],
                       preferred_element_type=f32) + bo_ref[0]
        h1 = _layernorm(x + attn, g1_ref[0], be1_ref[0])

        ff1 = _gelu(jnp.dot(h1.astype(bf16), w1_ref[0],
                            preferred_element_type=f32) + bf1_ref[0])
        ff = jnp.dot(ff1.astype(bf16), w2_ref[0],
                     preferred_element_type=f32) + bf2_ref[0]
        new_h = _layernorm(h1 + ff, g2_ref[0], be2_ref[0])

        hcur_ref[...] = new_h                                # carry to next layer

        @pl.when(l == pl.num_programs(1) - 1)
        def _():
            out_ref[...] = new_h.astype(bf16).reshape(Bt, S, D)

    return kernel


def head_kernel(h0_ref, hm_ref, fc_w_ref, fc_b_ref, cls_w_ref, cls_b_ref,
                lin_w_ref, lin_b_ref, g_ref, be_ref, clsf_ref, hmn_ref):
    """Pooler tanh + classifier; masked-LM linear + gelu + LN (decoder is separate)."""
    bf16, f32 = jnp.bfloat16, jnp.float32
    pooled = jnp.tanh(jnp.dot(h0_ref[...], fc_w_ref[...],
                              preferred_element_type=f32) + fc_b_ref[...])
    clsf_ref[...] = jnp.dot(pooled.astype(bf16), cls_w_ref[...],
                            preferred_element_type=f32) + cls_b_ref[...]
    hm = _gelu(jnp.dot(hm_ref[...], lin_w_ref[...],
                       preferred_element_type=f32) + lin_b_ref[...])        # (B*P, D)
    hmn_ref[...] = _layernorm(hm, g_ref[...], be_ref[...])


def decoder_kernel(hm_ref, emb_ref, db_ref, out_ref):
    """One vocab tile of the tied decoder: (B*P, D) x (TV, D)^T, D contracted in place."""
    out_ref[...] = jax.lax.dot_general(
        hm_ref[...].astype(jnp.bfloat16), emb_ref[...],
        (((1,), (1,)), ((), ())), preferred_element_type=jnp.float32) + db_ref[...]


# -------------------------------- wrapper / glue ------------------------------------

def _pick_bt(B, S, target_rows=256, max_rows=1024):
    """Largest divisor of B whose Bt*S rows fill the MXU (>=256 rows on v6e/v7x) but
    keep VMEM bounded."""
    best = 1
    for bt in range(1, B + 1):
        if B % bt == 0 and bt * S <= max_rows:
            best = bt
            if bt * S >= target_rows:
                break
    return best


def bert_pretrain_forward(params, cfg, input_ids, segment_ids, input_mask, masked_pos):
    B, S = input_ids.shape
    D, H, V, Dff, L = cfg["dim"], cfg["n_heads"], cfg["vocab_size"], cfg["dim_ff"], cfg["n_layers"]
    Dh = D // H
    P = masked_pos.shape[1]
    bf16 = jnp.bfloat16

    Bt = _pick_bt(B, S)
    nb = B // Bt
    R = Bt * S

    # glue: embedding table lookups (pure indexing).
    # TODO(synk): could be moved in-kernel via scalar-prefetch + pl.Element row gather.
    tok_e = jnp.take(params["tok_embed"], input_ids, axis=0)           # (B, S, D) f32
    pos_e = params["pos_embed"][:S]                                    # (S, D)
    seg_e = jnp.take(params["seg_embed"], segment_ids, axis=0)         # (B, S, D)
    bias3 = (-10000.0 * (1.0 - input_mask.astype(jnp.float32))).reshape(B, 1, S)

    # ----- embeddings: sum + LayerNorm, batch-blocked grid, bf16 output -----
    h = pl.pallas_call(
        embed_kernel,
        out_shape=jax.ShapeDtypeStruct((B, S, D), bf16),
        grid=(nb,),
        in_specs=[
            pl.BlockSpec((Bt, S, D), lambda b: (b, 0, 0)),
            pl.BlockSpec((S, D), lambda b: (0, 0)),
            pl.BlockSpec((Bt, S, D), lambda b: (b, 0, 0)),
            pl.BlockSpec((1, D), lambda b: (0, 0)),
            pl.BlockSpec((1, D), lambda b: (0, 0)),
        ],
        out_specs=pl.BlockSpec((Bt, S, D), lambda b: (b, 0, 0)),
        compiler_params=pltpu.CompilerParams(dimension_semantics=("parallel",),
                                             vmem_limit_bytes=VMEM_LIMIT),
    )(tok_e, pos_e, seg_e, params["embed_gamma"], params["embed_beta"])

    # ----- transformer stack: single pallas_call, grid = (batch_block, layer) -----
    def lyr_spec(shape):
        zeros = (0,) * len(shape)
        return pl.BlockSpec((1,) + shape, lambda b, l: (l,) + zeros)

    stack_in_specs = [
        pl.BlockSpec((Bt, S, D), lambda b, l: (b, 0, 0)),     # h   (resident across l)
        pl.BlockSpec((Bt, 1, S), lambda b, l: (b, 0, 0)),     # mask bias (resident)
        lyr_spec((D, 3 * D)), lyr_spec((1, 3 * D)),           # wqkv, bqkv
        lyr_spec((D, D)), lyr_spec((1, D)),                   # wo, bo
        lyr_spec((1, D)), lyr_spec((1, D)),                   # g1, b1
        lyr_spec((D, Dff)), lyr_spec((1, Dff)),               # w1, bf1
        lyr_spec((Dff, D)), lyr_spec((1, D)),                 # w2, bf2
        lyr_spec((1, D)), lyr_spec((1, D)),                   # g2, b2
    ]
    step_flops = 2 * R * D * (4 * D + 2 * Dff) + 4 * Bt * S * S * D
    stack_cost = pl.CostEstimate(
        flops=nb * L * step_flops,
        transcendentals=nb * L * (Bt * H * S * S + R * Dff),
        bytes_accessed=nb * L * 2 * (4 * D * D + 2 * D * Dff) + 4 * B * S * D)

    h = pl.pallas_call(
        make_stack_kernel(Bt, S, D, H, Dh, Dff),
        out_shape=jax.ShapeDtypeStruct((B, S, D), bf16),
        grid=(nb, L),
        in_specs=stack_in_specs,
        out_specs=pl.BlockSpec((Bt, S, D), lambda b, l: (b, 0, 0)),
        scratch_shapes=[pltpu.VMEM((R, D), jnp.float32),      # f32 residual carry
                        pltpu.VMEM((R, D), jnp.float32)],     # per-head context
        compiler_params=pltpu.CompilerParams(
            dimension_semantics=("parallel", "arbitrary"),
            vmem_limit_bytes=VMEM_LIMIT),
        cost_estimate=stack_cost,
    )(h, bias3,
      params["wqkv"], params["bqkv"], params["wo"], params["bo"],
      params["g1"], params["b1"], params["w1"], params["bf1"],
      params["w2"], params["bf2"], params["g2"], params["b2"])

    # glue: CLS-token slice and torch.gather equivalent (indexing only)
    h0 = h[:, 0]                                                       # (B, D) bf16
    h_masked = jnp.take_along_axis(h, masked_pos[:, :, None], axis=1)  # (B, P, D) bf16
    hm_flat = h_masked.reshape(B * P, D)

    vmem = lambda: pl.BlockSpec(memory_space=pltpu.MemorySpace.VMEM)
    logits_clsf, hm_norm = pl.pallas_call(
        head_kernel,
        out_shape=(jax.ShapeDtypeStruct((B, 2), jnp.float32),
                   jax.ShapeDtypeStruct((B * P, D), jnp.float32)),
        in_specs=[vmem() for _ in range(10)],
        out_specs=(vmem(), vmem()),
        compiler_params=pltpu.CompilerParams(vmem_limit_bytes=VMEM_LIMIT),
    )(h0, hm_flat, params["fc_w"], params["fc_b"], params["cls_w"], params["cls_b"],
      params["lin_w"], params["lin_b"], params["norm_gamma"], params["norm_beta"])

    # ----- masked-LM tied decoder: 512-wide vocab tiles over a padded bf16 table -----
    emb_bf = params["dec_emb"]                                         # (Vp, D) bf16
    dec_b = params["dec_bias_p"]                                       # (1, Vp) f32
    Vp = emb_bf.shape[0]
    dec_cost = pl.CostEstimate(flops=2 * B * P * D * Vp, transcendentals=0,
                               bytes_accessed=Vp * D * 2 + B * P * Vp * 4 + B * P * D * 4)
    logits_lm_flat = pl.pallas_call(
        decoder_kernel,
        out_shape=jax.ShapeDtypeStruct((B * P, Vp), jnp.float32),
        grid=(Vp // DEC_TV,),
        in_specs=[
            pl.BlockSpec((B * P, D), lambda j: (0, 0)),       # h_masked rows (resident)
            pl.BlockSpec((DEC_TV, D), lambda j: (j, 0)),      # embedding table, V-tiled
            pl.BlockSpec((1, DEC_TV), lambda j: (0, j)),      # decoder bias, V-tiled
        ],
        out_specs=pl.BlockSpec((B * P, DEC_TV), lambda j: (0, j)),
        compiler_params=pltpu.CompilerParams(dimension_semantics=("parallel",),
                                             vmem_limit_bytes=VMEM_LIMIT),
        cost_estimate=dec_cost,
    )(hm_norm, emb_bf, dec_b)

    logits_lm = logits_lm_flat[:, :V].reshape(B, P, V)
    return logits_lm, logits_clsf


# ------------------------------ deterministic params --------------------------------

def init_params(key, cfg):
    V, D, Dff = cfg["vocab_size"], cfg["dim"], cfg["dim_ff"]
    L, maxlen, nseg = cfg["n_layers"], cfg["max_len"], cfg["n_segments"]
    bf16 = jnp.bfloat16
    keys = iter(jax.random.split(key, 64))
    nrm = lambda shape, dt=jnp.float32: (0.02 * jax.random.normal(next(keys), shape)).astype(dt)
    zeros = lambda shape: jnp.zeros(shape, jnp.float32)
    ones = lambda shape: jnp.ones(shape, jnp.float32)

    params = dict(
        tok_embed=nrm((V, D)), pos_embed=nrm((maxlen, D)), seg_embed=nrm((nseg, D)),
        embed_gamma=ones((1, D)), embed_beta=zeros((1, D)),
        # transformer stack: weights stacked over L and pre-cast to bf16 ONCE here.
        wqkv=nrm((L, D, 3 * D), bf16), bqkv=nrm((L, 1, 3 * D)),
        wo=nrm((L, D, D), bf16), bo=nrm((L, 1, D)),
        g1=jnp.ones((L, 1, D), jnp.float32), b1=zeros((L, 1, D)),
        w1=nrm((L, D, Dff), bf16), bf1=nrm((L, 1, Dff)),
        w2=nrm((L, Dff, D), bf16), bf2=nrm((L, 1, D)),
        g2=jnp.ones((L, 1, D), jnp.float32), b2=zeros((L, 1, D)),
        # pretrain heads
        fc_w=nrm((D, D), bf16), fc_b=nrm((1, D)),
        lin_w=nrm((D, D), bf16), lin_b=nrm((1, D)),
        norm_gamma=ones((1, D)), norm_beta=zeros((1, D)),
        cls_w=nrm((D, 2), bf16), cls_b=nrm((1, 2)),
        dec_b=zeros((1, V)),            # decoder_bias init = zeros (matches module)
    )
    # Tied decoder table: bf16 copy of tok_embed, vocab padded to a DEC_TV multiple
    # (built once so the forward pass never re-converts / re-pads the (V, D) table).
    Vp = ((V + DEC_TV - 1) // DEC_TV) * DEC_TV
    params["dec_emb"] = jnp.pad(params["tok_embed"].astype(bf16), ((0, Vp - V), (0, 0)))
    params["dec_bias_p"] = jnp.pad(params["dec_b"], ((0, 0), (0, Vp - V)))
    return params


# --------------------------------------- main ---------------------------------------

if __name__ == "__main__":
    # Lane-dense small config: D and V are multiples of 128, S a multiple of 8.
    cfg = dict(dim=128, n_heads=4, dim_ff=256, n_layers=2,
               vocab_size=512, max_len=32, n_segments=2)
    B, S, P = 2, 16, 4

    key = jax.random.PRNGKey(0)
    kp, k1, k2, k3 = jax.random.split(key, 4)
    params = init_params(kp, cfg)

    input_ids = jax.random.randint(k1, (B, S), 0, cfg["vocab_size"], dtype=jnp.int32)
    segment_ids = jax.random.randint(k2, (B, S), 0, cfg["n_segments"], dtype=jnp.int32)
    input_mask = jnp.concatenate(
        [jnp.ones((B, S - 2), jnp.float32), jnp.zeros((B, 2), jnp.float32)], axis=1)
    masked_pos = jax.random.randint(k3, (B, P), 0, S, dtype=jnp.int32)

    logits_lm, logits_clsf = bert_pretrain_forward(
        params, cfg, input_ids, segment_ids, input_mask, masked_pos)
    jax.block_until_ready((logits_lm, logits_clsf))

    assert logits_lm.shape == (B, P, cfg["vocab_size"])
    assert logits_clsf.shape == (B, 2)
    assert logits_lm.dtype == jnp.float32 and logits_clsf.dtype == jnp.float32
    assert bool(jnp.all(jnp.isfinite(logits_lm))) and bool(jnp.all(jnp.isfinite(logits_clsf)))
    print("KERNEL_OK")
</pallas_src>

<mosaic_0001>
module attributes {stable_mosaic.version = 11 : i64} {
  func.func @embed_kernel(%arg0: i32, %arg1: memref<2x16x128xf32, #tpu.memory_space<vmem>>, %arg2: memref<16x128xf32, #tpu.memory_space<vmem>>, %arg3: memref<2x16x128xf32, #tpu.memory_space<vmem>>, %arg4: memref<1x128xf32, #tpu.memory_space<vmem>>, %arg5: memref<1x128xf32, #tpu.memory_space<vmem>>, %arg6: memref<2x16x128xbf16, #tpu.memory_space<vmem>>) attributes {dimension_semantics = [#tpu.dimension_semantics<parallel>], iteration_bounds = array<i64: 1>, scalar_prefetch = 0 : i64, scratch_operands = 0 : i64, tpu.core_type = #tpu.core_type<tc>, window_params = [{transform_indices = @transform_0, window_bounds = array<i64: 2, 16, 128>}, {pipeline_mode = #tpu.pipeline_mode<synchronous>, transform_indices = @transform_1, window_bounds = array<i64: 16, 128>}, {transform_indices = @transform_2, window_bounds = array<i64: 2, 16, 128>}, {pipeline_mode = #tpu.pipeline_mode<synchronous>, transform_indices = @transform_3, window_bounds = array<i64: 1, 128>}, {pipeline_mode = #tpu.pipeline_mode<synchronous>, transform_indices = @transform_4, window_bounds = array<i64: 1, 128>}, {transform_indices = @transform_5, window_bounds = array<i64: 2, 16, 128>}]} {
    %c0 = arith.constant 0 : index
    %c0_0 = arith.constant 0 : index
    %c0_1 = arith.constant 0 : index
    %0 = vector.load %arg1[%c0, %c0_0, %c0_1] : memref<2x16x128xf32, #tpu.memory_space<vmem>>, vector<2x16x128xf32>
    %c0_2 = arith.constant 0 : index
    %c0_3 = arith.constant 0 : index
    %1 = vector.load %arg2[%c0_2, %c0_3] : memref<16x128xf32, #tpu.memory_space<vmem>>, vector<16x128xf32>
    %2 = vector.shape_cast %1 : vector<16x128xf32> to vector<1x16x128xf32>
    %3 = vector.broadcast %2 : vector<1x16x128xf32> to vector<2x16x128xf32>
    %4 = arith.addf %0, %3 : vector<2x16x128xf32>
    %c0_4 = arith.constant 0 : index
    %c0_5 = arith.constant 0 : index
    %c0_6 = arith.constant 0 : index
    %5 = vector.load %arg3[%c0_4, %c0_5, %c0_6] : memref<2x16x128xf32, #tpu.memory_space<vmem>>, vector<2x16x128xf32>
    %6 = arith.addf %4, %5 : vector<2x16x128xf32>
    %c0_7 = arith.constant 0 : index
    %c0_8 = arith.constant 0 : index
    %7 = vector.load %arg4[%c0_7, %c0_8] : memref<1x128xf32, #tpu.memory_space<vmem>>, vector<1x128xf32>
    %c0_9 = arith.constant 0 : index
    %c0_10 = arith.constant 0 : index
    %8 = vector.load %arg5[%c0_9, %c0_10] : memref<1x128xf32, #tpu.memory_space<vmem>>, vector<1x128xf32>
    %cst = arith.constant dense<0.000000e+00> : vector<2x16xf32>
    %9 = vector.multi_reduction <add>, %6, %cst [2] : vector<2x16x128xf32> to vector<2x16xf32>
    %10 = vector.shape_cast %9 : vector<2x16xf32> to vector<2x16x1xf32>
    %cst_11 = arith.constant 1.280000e+02 : f32
    %11 = vector.broadcast %cst_11 : f32 to vector<2x16x1xf32>
    %12 = arith.divf %10, %11 : vector<2x16x1xf32>
    %13 = vector.broadcast %12 : vector<2x16x1xf32> to vector<2x16x128xf32>
    %14 = arith.subf %6, %13 : vector<2x16x128xf32>
    %15 = arith.mulf %14, %14 : vector<2x16x128xf32>
    %cst_12 = arith.constant dense<0.000000e+00> : vector<2x16xf32>
    %16 = vector.multi_reduction <add>, %15, %cst_12 [2] : vector<2x16x128xf32> to vector<2x16xf32>
    %17 = vector.shape_cast %16 : vector<2x16xf32> to vector<2x16x1xf32>
    %cst_13 = arith.constant 1.280000e+02 : f32
    %18 = vector.broadcast %cst_13 : f32 to vector<2x16x1xf32>
    %19 = arith.divf %17, %18 : vector<2x16x1xf32>
    %20 = vector.broadcast %12 : vector<2x16x1xf32> to vector<2x16x128xf32>
    %21 = arith.subf %6, %20 : vector<2x16x128xf32>
    %cst_14 = arith.constant 9.99999996E-13 : f32
    %22 = vector.broadcast %cst_14 : f32 to vector<2x16x1xf32>
    %23 = arith.addf %19, %22 : vector<2x16x1xf32>
    %24 = math.rsqrt %23 : vector<2x16x1xf32>
    %25 = vector.broadcast %24 : vector<2x16x1xf32> to vector<2x16x128xf32>
    %26 = arith.mulf %21, %25 : vector<2x16x128xf32>
    %27 = vector.shape_cast %7 : vector<1x128xf32> to vector<1x1x128xf32>
    %28 = vector.broadcast %27 : vector<1x1x128xf32> to vector<2x16x128xf32>
    %29 = arith.mulf %28, %26 : vector<2x16x128xf32>
    %30 = vector.shape_cast %8 : vector<1x128xf32> to vector<1x1x128xf32>
    %31 = vector.broadcast %30 : vector<1x1x128xf32> to vector<2x16x128xf32>
    %32 = arith.addf %29, %31 : vector<2x16x128xf32>
    %33 = arith.truncf %32 : vector<2x16x128xf32> to vector<2x16x128xbf16>
    %c0_15 = arith.constant 0 : index
    %c0_16 = arith.constant 0 : index
    %c0_17 = arith.constant 0 : index
    %34 = vector.load %arg6[%c0_15, %c0_16, %c0_17] : memref<2x16x128xbf16, #tpu.memory_space<vmem>>, vector<2x16x128xbf16>
    tpu.vector_store %arg6[%c0_15, %c0_16, %c0_17], %33 {strides = array<i32>} : memref<2x16x128xbf16, #tpu.memory_space<vmem>>, vector<2x16x128xbf16>,
    return
  }
  func.func @transform_0(%arg0: i32) -> (i32, i32, i32) {
    %c0_i32 = arith.constant 0 : i32
    %c0_i32_0 = arith.constant 0 : i32
    %c0_i32_1 = arith.constant 0 : i32
    return %arg0, %c0_i32, %c0_i32_0 : i32, i32, i32
  }
  func.func @transform_1(%arg0: i32) -> (i32, i32) {
    %c0_i32 = arith.constant 0 : i32
    %c0_i32_0 = arith.constant 0 : i32
    %c0_i32_1 = arith.constant 0 : i32
    return %c0_i32, %c0_i32_0 : i32, i32
  }
  func.func @transform_2(%arg0: i32) -> (i32, i32, i32) {
    %c0_i32 = arith.constant 0 : i32
    %c0_i32_0 = arith.constant 0 : i32
    %c0_i32_1 = arith.constant 0 : i32
    return %arg0, %c0_i32, %c0_i32_0 : i32, i32, i32
  }
  func.func @transform_3(%arg0: i32) -> (i32, i32) {
    %c0_i32 = arith.constant 0 : i32
    %c0_i32_0 = arith.constant 0 : i32
    %c0_i32_1 = arith.constant 0 : i32
    return %c0_i32, %c0_i32_0 : i32, i32
  }
  func.func @transform_4(%arg0: i32) -> (i32, i32) {
    %c0_i32 = arith.constant 0 : i32
    %c0_i32_0 = arith.constant 0 : i32
    %c0_i32_1 = arith.constant 0 : i32
    return %c0_i32, %c0_i32_0 : i32, i32
  }
  func.func @transform_5(%arg0: i32) -> (i32, i32, i32) {
    %c0_i32 = arith.constant 0 : i32
    %c0_i32_0 = arith.constant 0 : i32
    %c0_i32_1 = arith.constant 0 : i32
    return %arg0, %c0_i32, %c0_i32_0 : i32, i32, i32
  }
}

</mosaic_0001>

<bundles_post_ra>
// kernel: tpu_custom_call.1
= control target key start
LH: loop header
LB: loop body
LE: loop exit
PB: predicated region body
PF: predicated region fallthrough
CT: control target
= control target key end

     0   :  { %10 = vsyncpa [#allocation3], 0  ;;  %s428_s0 = inlined_call_operand.hbm [shape: f32[2,16,128], index: 0, kind: input, shape index: {}]   ;;  %s429_s1 = inlined_call_operand.hbm [shape: f32[16,128], index: 1, kind: input, shape index: {}]   ;;  %s430_s2 = inlined_call_operand.hbm [shape: f32[2,16,128], index: 2, kind: input, shape index: {}]   ;;  %s431_s3 = inlined_call_operand.vmem [shape: f32[1,128], index: 3, kind: input, shape index: {}]   ;;  %s432_s4 = inlined_call_operand.vmem [shape: f32[1,128], index: 4, kind: input, shape index: {}]   ;;  %s433_s5 = inlined_call_operand.hbm [shape: bf16[2,16,128], index: 5, kind: output, shape index: {}]  }
   0x1   :  { %11 = vsyncpa [#allocation6], 0 }
   0x2   :  { %12 = vsyncpa [#allocation4], 0  ;;  %s30_s20 = sshll.u32 %s429_s1, 4  ;;  %s351_s21 = smov [#allocation5]   ;;  %s31_s20 = int_to_ptr.hbm [resolvable:$true] %s30_s20 }
   0x3   :  { %s32_s22 = sshll.u32 %s351_s21, 4  ;;  %s17_s25 = sshll.u32 %s428_s0, 4  ;;  %s33_s22 = int_to_ptr.vmem [resolvable:$true] %s32_s22  ;;  %s18_s25 = int_to_ptr.hbm [resolvable:$true] %s17_s25 }
   0x4   :  { %s352_s26 = smov 128   ;;  %s353_s27 = smov 8  }
   0x5   :  { %38 = dma.hbm_to_vmem [thread:$0]  %s31_s20, 256, %s33_s22, [#allocation6], %s352_s26, %s352_s26, %s353_s27  }
   0x6   :  { %s354_s28 = smov [#allocation2]   ;;  %s43_s7 = sshll.u32 %s430_s2, 4  ;;  %s44_s7 = int_to_ptr.hbm [resolvable:$true] %s43_s7 }
   0x7   :  { %s19_s29 = sshll.u32 %s354_s28, 4  ;;  %s355_s1 = smov [#allocation7]   ;;  %s20_s29 = int_to_ptr.vmem [resolvable:$true] %s19_s29 }
   0x8   :  { %25 = dma.hbm_to_vmem [thread:$0]  %s18_s25, 512, %s20_s29, [#allocation3], %s352_s26, %s352_s26, %s353_s27  }
   0x9   :  { %s45_s8 = sshll.u32 %s355_s1, 4  ;;  %s46_s8 = int_to_ptr.vmem [resolvable:$true] %s45_s8 }
   0xa   :  { %51 = dma.hbm_to_vmem [thread:$0]  %s44_s7, 512, %s46_s8, [#allocation6], %s352_s26, %s352_s26, %s353_s27  }
   0xb   :  { %345 = dma.done.wait [#allocation3], 512  }
   0xc   :  { %346 = vsyncadd [#allocation3], 4294966784 }
   0xd   :  { %347 = dma.done.wait [#allocation6], 768  }
   0xe   :  { %348 = vsyncadd [#allocation6], 4294966528  ;;  %v70_v0 = vld [vmem:[#allocation2 + $0x10] sm:$0xff]  ;;  %v72_v1 = vld [vmem:[#allocation5] sm:$0xff]  ;;  %v356_v18 = vmov 128.0   ;;  %s203_s14 = sshll.u32 %s433_s5, 4  ;;  %s204_s14 = int_to_ptr.hbm [resolvable:$true] %s203_s14 }
   0xf   :  { %v80_v2 = vld [vmem:[#allocation7 + $0x10] sm:$0xff]  ;;  %v76_v3 = vadd.f32 %v72_v1, %v70_v0  ;;  %v78_v5 = vld [vmem:[#allocation7] sm:$0xff]  ;;  %v71_v7 = vld [vmem:[#allocation2 + $0x18] sm:$0xff]  ;;  %239 = vrcp.f32 %v356_v18  ;;  %s359_s15 = smov 4  }
  0x10   :  { %v68_v4 = vld [vmem:[#allocation2] sm:$0xff]  ;;  %v73_v8 = vld [vmem:[#allocation5 + $0x8] sm:$0xff]  ;;  %v79_v15 = vld [vmem:[#allocation7 + $0x8] sm:$0xff] }
  0x11   :  { %v74_v6 = vadd.f32 %v72_v1, %v68_v4  ;;  %v84_v9 = vadd.f32 %v80_v2, %v76_v3  ;;  %v69_v10 = vld [vmem:[#allocation2 + $0x8] sm:$0xff]  ;;  %v77_v12 = vadd.f32 %v73_v8, %v71_v7 }
  0x12   :  { %v81_v13 = vld [vmem:[#allocation7 + $0x18] sm:$0xff]  ;;  %v75_v14 = vadd.f32 %v73_v8, %v69_v10 }
  0x13   :  { %v82_v11 = vadd.f32 %v78_v5, %v74_v6  ;;  %92 = vadd.xlane.f32.xlu1 %v84_v9  ;;  %v85_v16 = vadd.f32 %v81_v13, %v77_v12  ;;  %v237_v12 = vld [vmem:[%s431_s3] ss:$0 sm:$0xff]  ;;  %s357_s3 = smov [#allocation8]  }
  0x14   :  { %v83_v17 = vadd.f32 %v79_v15, %v75_v14  ;;  %s201_s11 = sshll.u32 %s357_s3, 4  ;;  %s202_s11 = int_to_ptr.vmem [resolvable:$true] %s201_s11 }
  0x15   :  { %88 = vadd.xlane.f32.xlu0 %v82_v11  ;;  %v240_v19 = vpop.eup %239 }
  0x16   :  { %v97_v20 = vmul.f32 128.0, %v240_v19  ;;  %vm101_vm0 = vweird.f32 %v240_v19 }
  0x18   :  { %v98_v21 = vsub.f32 1.0, %v97_v20 }
  0x1a   :  { %v99_v22 = vmul.f32 %v240_v19, %v98_v21 }
  0x1b   :  { %94 = vadd.xlane.f32.xlu1 %v85_v16 }
  0x1c   :  { %v100_v23 = vadd.f32 %v240_v19, %v99_v22 }
  0x1d   :  { %90 = vadd.xlane.f32.xlu0 %v83_v17 }
  0x1e   :  { %v102_v24 = vsel %vm101_vm0, %v240_v19, %v100_v23  ;;  %v238_v19 = vld [vmem:[%s432_s4] ss:$0 sm:$0xff]  ;;  %s358_s4 = smov 64  }
  0x86   :  { %v93_v25 = vpop.xlane.xlu1 %92 }
  0x87   :  { %v105_v26 = vmul.f32 %v102_v24, %v93_v25 }
  0x88   :  { %v89_v27 = vpop.xlane.xlu0 %88 }
  0x89   :  { %v103_v28 = vmul.f32 %v102_v24, %v89_v27  ;;  %v399_v29 = vsub.f32 %v84_v9, %v105_v26 }
  0x8b   :  { %v401_v30 = vsub.f32 %v82_v11, %v103_v28  ;;  %v113_v31 = vmul.f32 %v399_v29, %v399_v29 }
  0x8d   :  { %v111_v32 = vmul.f32 %v401_v30, %v401_v30  ;;  %119 = vadd.xlane.f32.xlu0 %v113_v31 }
  0x8e   :  { %v95_v33 = vpop.xlane.xlu1 %94 }
  0x8f   :  { %115 = vadd.xlane.f32.xlu2 %v111_v32  ;;  %v106_v34 = vmul.f32 %v102_v24, %v95_v33 }
  0x90   :  { %v91_v35 = vpop.xlane.xlu0 %90 }
  0x91   :  { %v104_v36 = vmul.f32 %v102_v24, %v91_v35  ;;  %v407_v37 = vsub.f32 %v85_v16, %v106_v34 }
  0x93   :  { %v409_v38 = vsub.f32 %v83_v17, %v104_v36  ;;  %v114_v39 = vmul.f32 %v407_v37, %v407_v37 }
  0x95   :  { %v112_v40 = vmul.f32 %v409_v38, %v409_v38  ;;  %121 = vadd.xlane.f32.xlu1 %v114_v39 }
  0x97   :  { %117 = vadd.xlane.f32.xlu2 %v112_v40 }
 0x100   :  { %v120_v41 = vpop.xlane.xlu0 %119 }
 0x101   :  { %v125_v43 = vmul.f32 %v120_v41, %v102_v24 }
 0x102   :  { %v116_v42 = vpop.xlane.xlu2 %115 }
 0x103   :  { %v123_v44 = vmul.f32 %v116_v42, %v102_v24  ;;  %v129_v45 = vadd.f32 1e-12, %v125_v43 }
 0x105   :  { %v127_v46 = vadd.f32 1e-12, %v123_v44  ;;  %241 = vrsqrt.f32 %v129_v45  ;;  %vm157_vm3 = vweird.f32 %v129_v45 }
 0x107   :  { %243 = vrsqrt.f32 %v127_v46  ;;  %vm137_vm4 = vweird.f32 %v127_v46 }
 0x108   :  { %v122_v47 = vpop.xlane.xlu1 %121 }
 0x109   :  { %v126_v48 = vmul.f32 %v122_v47, %v102_v24 }
 0x10a   :  { %v118_v49 = vpop.xlane.xlu2 %117 }
 0x10b   :  { %v124_v50 = vmul.f32 %v118_v49, %v102_v24  ;;  %v242_v51 = vpop.eup %241  ;;  %v130_v52 = vadd.f32 1e-12, %v126_v48 }
 0x10c   :  { %v152_v54 = vmul.f32 %v242_v51, %v129_v45  ;;  %vm158_vm1 = vweird.f32 %v242_v51 }
 0x10d   :  { %v244_v53 = vpop.eup %243  ;;  %v128_v55 = vadd.f32 1e-12, %v124_v50  ;;  %245 = vrsqrt.f32 %v130_v52  ;;  %vm159_vm5 = vmor %vm157_vm3, %vm158_vm1  ;;  %vm167_vm9 = vweird.f32 %v130_v52 }
 0x10e   :  { %v132_v56 = vmul.f32 %v244_v53, %v127_v46  ;;  %v153_v57 = vmul.f32 %v242_v51, %v152_v54  ;;  %vm138_vm2 = vweird.f32 %v244_v53 }
 0x10f   :  { %247 = vrsqrt.f32 %v128_v55  ;;  %vm139_vm6 = vmor %vm137_vm4, %vm138_vm2  ;;  %vm147_vm11 = vweird.f32 %v128_v55 }
 0x110   :  { %v133_v58 = vmul.f32 %v244_v53, %v132_v56  ;;  %v154_v59 = vmul.f32 0.5, %v153_v57 }
 0x112   :  { %v134_v60 = vmul.f32 0.5, %v133_v58  ;;  %v155_v61 = vsub.f32 1.5, %v154_v59 }
 0x113   :  { %v246_v62 = vpop.eup %245 }
 0x114   :  { %v135_v63 = vsub.f32 1.5, %v134_v60  ;;  %v156_v1 = vmul.f32 %v242_v51, %v155_v61  ;;  %v162_v2 = vmul.f32 %v246_v62, %v130_v52  ;;  %vm168_vm7 = vweird.f32 %v246_v62 }
 0x115   :  { %v248_v0 = vpop.eup %247  ;;  %vm169_vm10 = vmor %vm167_vm9, %vm168_vm7 }
 0x116   :  { %v136_v3 = vmul.f32 %v244_v53, %v135_v63  ;;  %v142_v4 = vmul.f32 %v248_v0, %v128_v55  ;;  %v163_v5 = vmul.f32 %v246_v62, %v162_v2  ;;  %v160_v7 = vsel %vm159_vm5, %v242_v51, %v156_v1 }
 0x117   :  { %v173_v13 = vmul.f32 %v160_v7, %v399_v29  ;;  %vm148_vm8 = vweird.f32 %v248_v0 }
 0x118   :  { %v143_v6 = vmul.f32 %v248_v0, %v142_v4  ;;  %v164_v8 = vmul.f32 0.5, %v163_v5  ;;  %v140_v9 = vsel %vm139_vm6, %v244_v53, %v136_v3  ;;  %vm149_vm12 = vmor %vm147_vm11, %vm148_vm8 }
 0x119   :  { %v171_v15 = vmul.f32 %v140_v9, %v401_v30  ;;  %v180_v20 = vmul.f32 %v237_v12, %v173_v13 }
 0x11a   :  { %v144_v10 = vmul.f32 0.5, %v143_v6  ;;  %v165_v11 = vsub.f32 1.5, %v164_v8 }
 0x11b   :  { %v178_v23 = vmul.f32 %v237_v12, %v171_v15  ;;  %v187_v27 = vadd.f32 %v238_v19, %v180_v20 }
 0x11c   :  { %v145_v14 = vsub.f32 1.5, %v144_v10  ;;  %v166_v16 = vmul.f32 %v246_v62, %v165_v11 }
 0x11d   :  { %v185_v29 = vadd.f32 %v238_v19, %v178_v23 }
 0x11e   :  { %v146_v17 = vmul.f32 %v248_v0, %v145_v14  ;;  %v170_v18 = vsel %vm169_vm10, %v246_v62, %v166_v16 }
 0x11f   :  { %v174_v21 = vmul.f32 %v170_v18, %v407_v37 }
 0x120   :  { %v150_v22 = vsel %vm149_vm12, %v248_v0, %v146_v17 }
 0x121   :  { %v172_v24 = vmul.f32 %v150_v22, %v409_v38  ;;  %v181_v25 = vmul.f32 %v237_v12, %v174_v21 }
 0x123   :  { %v179_v26 = vmul.f32 %v237_v12, %v172_v24  ;;  %v188_v28 = vadd.f32 %v238_v19, %v181_v25 }
 0x125   :  { %v186_v30 = vadd.f32 %v238_v19, %v179_v26  ;;  %v225_v31 = vpack.c.bf16 %v188_v28, %v187_v27 }
 0x127   :  { %v220_v32 = vpack.c.bf16 %v186_v30, %v185_v29  ;;  %227 = vst [vmem:[#allocation8 + $0x8] sm:$0xff] %v225_v31  }
 0x129   :  { %221 = vst [vmem:[#allocation8] sm:$0xff] %v220_v32  }
 0x12a   :  { %209 = dma.vmem_to_hbm [thread:$0]  %s202_s11, 256, %s204_s14, [#allocation4], %s358_s4, %s358_s4, %s359_s15  }
 0x12b   :  { %349 = dma.done.wait [#allocation4], 256  }
 0x12c   :  { %350 = vsyncadd [#allocation4], 4294967040 }
 0x12d   :  { %214 = vsyncpa [#allocation3], 1 }
 0x12e   :  { %215 = vsyncpa [#allocation6], 1 }
 0x12f   :  { %216 = vsyncpa [#allocation4], 1 }

</bundles_post_ra>
